<compile_context>
chip_gen: v7x
topology: tpu7x:2x2x1
jax: 0.10.0
libtpu: 0.0.40
codegen_flags: <defaults>
</compile_context>

<pallas_src>
import math
import functools

import jax
import jax.numpy as jnp
from jax.experimental import pallas as pl
from jax.experimental.pallas import tpu as pltpu


# Fixed weight from NN_1Layer_Fixed.__init__, stored (in_features, out_features) = (4, 3).
_FIXED_WEIGHT_ROWS = (
    (0.0001, 0.0001, 0.0001),
    (0.0010, 0.0020, 0.0010),
    (0.0002, 0.0320, 0.0020),
    (0.0030, 0.0015, 0.0030),
)
_IN_FEATURES = len(_FIXED_WEIGHT_ROWS)       # 4  -> forces past_n_days == 1
_OUT_FEATURES = len(_FIXED_WEIGHT_ROWS[0])   # 3


def _nn1_kernel(xb_ref, o_ref, *, activation):
    # xb_ref: SMEM (7,) f32  -- [x0, x1, x2, x3, b0, b1, b2] (one input DMA)
    # o_ref : VMEM (1, 3) f32
    col = jax.lax.broadcasted_iota(jnp.int32, (1, _OUT_FEATURES), 1)  # [[0,1,2]]

    def vec3(a, b, c):
        # Build a (1, 3) vector from three scalars (Python floats or SMEM
        # scalar reads) without creating a captured array constant.
        return jnp.where(col == 0, a, jnp.where(col == 1, b, c))

    # bias
    r = vec3(xb_ref[_IN_FEATURES + 0],
             xb_ref[_IN_FEATURES + 1],
             xb_ref[_IN_FEATURES + 2])

    # (1,4) @ (4,3) as 4 scalar-broadcast FMAs on the VPU; weight rows are
    # compile-time scalar literals.
    for i, (w0, w1, w2) in enumerate(_FIXED_WEIGHT_ROWS):
        r = r + xb_ref[i] * vec3(w0, w1, w2)

    # act_fn
    if activation == "leaky_relu":
        r = jnp.where(r > 0, r, 0.01 * r)
    elif activation == "elu":
        r = jnp.where(r > 0, r, jnp.expm1(r))             # nn.ELU(alpha=1)
    elif activation == "sigmoid":
        r = jax.nn.sigmoid(r)

    # torch.clamp(r, min=0.0, max=1). For sigmoid the clamp is a mathematical
    # no-op (output already in (0,1)), so skip it. For ELU the reference adds
    # +1 AFTER the clamp (output lands in [1, 2]) -- keep that exact ordering.
    if activation != "sigmoid":
        r = jnp.clip(r, 0.0, 1.0)
    if activation == "elu":
        r = r + 1.0

    o_ref[...] = r


def nn_1layer_fixed_forward(input_sird_values, bias, activation="sigmoid"):
    """Pallas implementation of NN_1Layer_Fixed.forward.

    input_sird_values: (past_n_days, 4) float32; the fixed (4, 3) weight forces
                       past_n_days == 1 (in_features = past_n_days * 4 = 4).
    bias:              (3,) float32 parameter.
    returns:           (3,) float32
    """
    features = jnp.ravel(input_sird_values).astype(jnp.float32)   # torch.flatten
    assert features.shape[0] == _IN_FEATURES, "Wrong Input Features."
    b = jnp.ravel(bias).astype(jnp.float32)
    xb = jnp.concatenate([features, b])                           # (7,) -> single SMEM DMA

    kernel = functools.partial(_nn1_kernel, activation=activation)
    n_transc = {"sigmoid": 2 * _OUT_FEATURES,   # exp + reciprocal per lane
                "elu": _OUT_FEATURES}.get(activation, 0)

    out = pl.pallas_call(
        kernel,
        out_shape=jax.ShapeDtypeStruct((1, _OUT_FEATURES), jnp.float32),
        in_specs=[pl.BlockSpec(memory_space=pltpu.MemorySpace.SMEM)],      # features+bias
        out_specs=pl.BlockSpec(memory_space=pltpu.MemorySpace.VMEM),
        cost_estimate=pl.CostEstimate(
            flops=2 * _IN_FEATURES * _OUT_FEATURES + 4 * _OUT_FEATURES,
            transcendentals=n_transc,
            bytes_accessed=4 * (_IN_FEATURES + 2 * _OUT_FEATURES),
        ),
    )(xb)
    return out.reshape(-1)


def _init_bias(key):
    # SimplifiedLinear.reset_parameters: bound = 1/sqrt(fan_in), where torch's
    # _calculate_fan_in_and_fan_out on the (in, out)-stored (4, 3) weight
    # reports fan_in = size(1) = 3. Deterministic via PRNGKey (init-only; the
    # torch module uses its own RNG so exact values differ by construction).
    bound = 1.0 / math.sqrt(_OUT_FEATURES)
    return jax.random.uniform(key, (_OUT_FEATURES,), jnp.float32, -bound, bound)


if __name__ == "__main__":
    key = jax.random.PRNGKey(0)
    k_b, k_x = jax.random.split(key)

    bias = _init_bias(k_b)
    past_n_days = 1   # forced by the fixed (4, 3) weight (in_features = 4)
    x = jax.random.normal(k_x, (past_n_days, 4), dtype=jnp.float32)

    # Pure-JAX references (same math, no Pallas).
    W = jnp.asarray(_FIXED_WEIGHT_ROWS, dtype=jnp.float32)
    z = x.reshape(1, -1) @ W + bias
    refs = {
        "sigmoid": jnp.clip(jax.nn.sigmoid(z), 0.0, 1.0).reshape(-1),
        "leaky_relu": jnp.clip(jnp.where(z > 0, z, 0.01 * z), 0.0, 1.0).reshape(-1),
        "elu": (jnp.clip(jnp.where(z > 0, z, jnp.expm1(z)), 0.0, 1.0) + 1.0).reshape(-1),
    }

    for act, ref in refs.items():
        out = jax.block_until_ready(nn_1layer_fixed_forward(x, bias, activation=act))
        assert jnp.allclose(out, ref, atol=1e-6, rtol=1e-5), (act, out, ref)

    print("KERNEL_OK")
</pallas_src>

<mosaic_0001>
module attributes {stable_mosaic.version = 11 : i64} {
  func.func @_nn1_kernel(%arg0: memref<7xf32, #tpu.memory_space<smem>>, %arg1: memref<1x3xf32, #tpu.memory_space<vmem>>) attributes {dimension_semantics = [], scalar_prefetch = 0 : i64, scratch_operands = 0 : i64, tpu.core_type = #tpu.core_type<tc>} {
    %0 = tpu.iota {dimensions = array<i32: 1>} : vector<1x3xi32>
    %c4 = arith.constant 4 : index
    %1 = memref.load %arg0[%c4] : memref<7xf32, #tpu.memory_space<smem>>
    %c5 = arith.constant 5 : index
    %2 = memref.load %arg0[%c5] : memref<7xf32, #tpu.memory_space<smem>>
    %c6 = arith.constant 6 : index
    %3 = memref.load %arg0[%c6] : memref<7xf32, #tpu.memory_space<smem>>
    %c0_i32 = arith.constant 0 : i32
    %4 = vector.broadcast %c0_i32 : i32 to vector<1x3xi32>
    %5 = arith.cmpi eq, %0, %4 : vector<1x3xi32>
    %c1_i32 = arith.constant 1 : i32
    %6 = vector.broadcast %c1_i32 : i32 to vector<1x3xi32>
    %7 = arith.cmpi eq, %0, %6 : vector<1x3xi32>
    %8 = vector.broadcast %2 : f32 to vector<1x3xf32>
    %9 = vector.broadcast %3 : f32 to vector<1x3xf32>
    %10 = arith.select %7, %8, %9 : vector<1x3xi1>, vector<1x3xf32>
    %11 = vector.broadcast %1 : f32 to vector<1x3xf32>
    %12 = arith.select %5, %11, %10 : vector<1x3xi1>, vector<1x3xf32>
    %c0 = arith.constant 0 : index
    %13 = memref.load %arg0[%c0] : memref<7xf32, #tpu.memory_space<smem>>
    %c0_i32_0 = arith.constant 0 : i32
    %14 = vector.broadcast %c0_i32_0 : i32 to vector<1x3xi32>
    %15 = arith.cmpi eq, %0, %14 : vector<1x3xi32>
    %c1_i32_1 = arith.constant 1 : i32
    %16 = vector.broadcast %c1_i32_1 : i32 to vector<1x3xi32>
    %17 = arith.cmpi eq, %0, %16 : vector<1x3xi32>
    %cst = arith.constant 9.99999974E-5 : f32
    %cst_2 = arith.constant 9.99999974E-5 : f32
    %18 = vector.broadcast %cst : f32 to vector<1x3xf32>
    %19 = vector.broadcast %cst_2 : f32 to vector<1x3xf32>
    %20 = arith.select %17, %18, %19 : vector<1x3xi1>, vector<1x3xf32>
    %cst_3 = arith.constant 9.99999974E-5 : f32
    %21 = vector.broadcast %cst_3 : f32 to vector<1x3xf32>
    %22 = arith.select %15, %21, %20 : vector<1x3xi1>, vector<1x3xf32>
    %23 = vector.broadcast %13 : f32 to vector<1x3xf32>
    %24 = arith.mulf %23, %22 : vector<1x3xf32>
    %25 = arith.addf %12, %24 : vector<1x3xf32>
    %c1 = arith.constant 1 : index
    %26 = memref.load %arg0[%c1] : memref<7xf32, #tpu.memory_space<smem>>
    %c0_i32_4 = arith.constant 0 : i32
    %27 = vector.broadcast %c0_i32_4 : i32 to vector<1x3xi32>
    %28 = arith.cmpi eq, %0, %27 : vector<1x3xi32>
    %c1_i32_5 = arith.constant 1 : i32
    %29 = vector.broadcast %c1_i32_5 : i32 to vector<1x3xi32>
    %30 = arith.cmpi eq, %0, %29 : vector<1x3xi32>
    %cst_6 = arith.constant 2.000000e-03 : f32
    %cst_7 = arith.constant 1.000000e-03 : f32
    %31 = vector.broadcast %cst_6 : f32 to vector<1x3xf32>
    %32 = vector.broadcast %cst_7 : f32 to vector<1x3xf32>
    %33 = arith.select %30, %31, %32 : vector<1x3xi1>, vector<1x3xf32>
    %cst_8 = arith.constant 1.000000e-03 : f32
    %34 = vector.broadcast %cst_8 : f32 to vector<1x3xf32>
    %35 = arith.select %28, %34, %33 : vector<1x3xi1>, vector<1x3xf32>
    %36 = vector.broadcast %26 : f32 to vector<1x3xf32>
    %37 = arith.mulf %36, %35 : vector<1x3xf32>
    %38 = arith.addf %25, %37 : vector<1x3xf32>
    %c2 = arith.constant 2 : index
    %39 = memref.load %arg0[%c2] : memref<7xf32, #tpu.memory_space<smem>>
    %c0_i32_9 = arith.constant 0 : i32
    %40 = vector.broadcast %c0_i32_9 : i32 to vector<1x3xi32>
    %41 = arith.cmpi eq, %0, %40 : vector<1x3xi32>
    %c1_i32_10 = arith.constant 1 : i32
    %42 = vector.broadcast %c1_i32_10 : i32 to vector<1x3xi32>
    %43 = arith.cmpi eq, %0, %42 : vector<1x3xi32>
    %cst_11 = arith.constant 3.200000e-02 : f32
    %cst_12 = arith.constant 2.000000e-03 : f32
    %44 = vector.broadcast %cst_11 : f32 to vector<1x3xf32>
    %45 = vector.broadcast %cst_12 : f32 to vector<1x3xf32>
    %46 = arith.select %43, %44, %45 : vector<1x3xi1>, vector<1x3xf32>
    %cst_13 = arith.constant 2.000000e-04 : f32
    %47 = vector.broadcast %cst_13 : f32 to vector<1x3xf32>
    %48 = arith.select %41, %47, %46 : vector<1x3xi1>, vector<1x3xf32>
    %49 = vector.broadcast %39 : f32 to vector<1x3xf32>
    %50 = arith.mulf %49, %48 : vector<1x3xf32>
    %51 = arith.addf %38, %50 : vector<1x3xf32>
    %c3 = arith.constant 3 : index
    %52 = memref.load %arg0[%c3] : memref<7xf32, #tpu.memory_space<smem>>
    %c0_i32_14 = arith.constant 0 : i32
    %53 = vector.broadcast %c0_i32_14 : i32 to vector<1x3xi32>
    %54 = arith.cmpi eq, %0, %53 : vector<1x3xi32>
    %c1_i32_15 = arith.constant 1 : i32
    %55 = vector.broadcast %c1_i32_15 : i32 to vector<1x3xi32>
    %56 = arith.cmpi eq, %0, %55 : vector<1x3xi32>
    %cst_16 = arith.constant 1.500000e-03 : f32
    %cst_17 = arith.constant 3.000000e-03 : f32
    %57 = vector.broadcast %cst_16 : f32 to vector<1x3xf32>
    %58 = vector.broadcast %cst_17 : f32 to vector<1x3xf32>
    %59 = arith.select %56, %57, %58 : vector<1x3xi1>, vector<1x3xf32>
    %cst_18 = arith.constant 3.000000e-03 : f32
    %60 = vector.broadcast %cst_18 : f32 to vector<1x3xf32>
    %61 = arith.select %54, %60, %59 : vector<1x3xi1>, vector<1x3xf32>
    %62 = vector.broadcast %52 : f32 to vector<1x3xf32>
    %63 = arith.mulf %62, %61 : vector<1x3xf32>
    %64 = arith.addf %51, %63 : vector<1x3xf32>
    %65 = arith.negf %64 : vector<1x3xf32>
    %66 = math.exp %65 : vector<1x3xf32>
    %cst_19 = arith.constant 1.000000e+00 : f32
    %67 = vector.broadcast %cst_19 : f32 to vector<1x3xf32>
    %68 = arith.addf %67, %66 : vector<1x3xf32>
    %69 = arith.divf %67, %68 : vector<1x3xf32>
    %c0_20 = arith.constant 0 : index
    %c0_21 = arith.constant 0 : index
    %70 = vector.load %arg1[%c0_20, %c0_21] : memref<1x3xf32, #tpu.memory_space<vmem>>, vector<1x3xf32>
    tpu.vector_store %arg1[%c0_20, %c0_21], %69 {strides = array<i32>} : memref<1x3xf32, #tpu.memory_space<vmem>>, vector<1x3xf32>,
    return
  }
}

</mosaic_0001>

<bundles_post_ra>
// kernel: tpu_custom_call.1
= control target key start
LH: loop header
LB: loop body
LE: loop exit
PB: predicated region body
PF: predicated region fallthrough
CT: control target
= control target key end

     0   :  { %6 = vsyncpa [#allocation4], 0  ;;  %s172_s0 = inlined_call_operand.hbm [shape: f32[7], index: 0, kind: input, shape index: {}]   ;;  %s173_s1 = inlined_call_operand.hbm [shape: f32[1,3], index: 1, kind: output, shape index: {}]  }
   0x1   :  { %7 = vsyncpa [#allocation3], 0  ;;  %s93_s8 = scalar_lea.hbm %s172_s0, 16 }
   0x2   :  { %p94_p0 = scmp.ne.s32.totalorder %s172_s0, %s93_s8  ;;  %p97_p1 = scmp.lt.u32.totalorder %s93_s8, %s172_s0 }
   0x4   :  { %p99_p2 = pnand %p97_p1, %p94_p0 }
   0x6   :  { %102 = shalt.err (!%p99_p2)
}
   0x7   :  { %s129_s13 = smov [#allocation2]  }
   0x8   :  { %15 = dma.hbm_to_smem %s172_s0, 16, %s129_s13, [#allocation4]  }
   0x9   :  { %125 = dma.done.wait [#allocation4], 16  }
   0xa   :  { %126 = vsyncadd [#allocation4], 4294967280 }
   0xb   :  { %19 = sfence }
   0xc   :  { %v20_v0 = vlaneseq  ;;  %s77_s16 = sld [smem:[#allocation2 + $0x4]]  ;;  %s78_s17 = sld [smem:[#allocation2 + $0x5]]  ;;  %v130_v2 = vmov 0.001   ;;  %v131_v4 = vmov 0.002  }
   0xd   :  { %s79_s18 = sld [smem:[#allocation2 + $0x6]]  ;;  %s32_s19 = sld [smem:[#allocation2]]  ;;  %v132_v9 = vmov 0.003   ;;  %vm60_vm2 = vcmask 16384  }
   0xe   :  { %v21_v1 = vand.u32 127, %v20_v0  ;;  %s80_s20 = sld [smem:[#allocation2 + $0x1]]  ;;  %s81_s21 = sld [smem:[#allocation2 + $0x2]] }
   0xf   :  { %s82_s22 = sld [smem:[#allocation2 + $0x3]]  ;;  %s133_s0 = smov [#allocation5]  }
  0x10   :  { %vm25_vm0 = vcmp.eq.s32.totalorder %v21_v1, 0  ;;  %vm26_vm1 = vcmp.eq.s32.totalorder %v21_v1, 1  ;;  %s68_s23 = sshll.u32 %s133_s0, 4  ;;  %s69_s23 = int_to_ptr.vmem [resolvable:$true] %s68_s23 }
  0x11   :  { %v37_v3 = vsel %vm26_vm1, 0.002, %v130_v2  ;;  %v43_v5 = vsel %vm26_vm1, 0.032, %v131_v4  ;;  %v49_v10 = vsel %vm26_vm1, 0.0015, %v132_v9  ;;  %p108_p4 = scmp.lt.s32.totalorder %s69_s23, %s69_s23 }
  0x12   :  { %v27_v6 = vstv %s78_s17  ;;  %v30_v7 = vstv %s77_s16  ;;  %v38_v8 = vsel %vm25_vm0, 0.001, %v37_v3  ;;  %v44_v13 = vsel %vm25_vm0, 0.0002, %v43_v5  ;;  %s103_s24 = scalar_lea.vmem %s69_s23, 16  ;;  %s107_s25 = scalar_lea.vmem %s69_s23, 32 }
  0x13   :  { %v28_v11 = vstv %s79_s18  ;;  %v33_v12 = vstv %s32_s19  ;;  %v50_v20 = vsel %vm25_vm0, 0.003, %v49_v10  ;;  %p104_p3 = scmp.ne.s32.totalorder %s69_s23, %s103_s24  ;;  %p109_p5 = scmp.lt.s32.totalorder %s107_s25, %s103_s24 }
  0x14   :  { %v29_v14 = vsel %vm26_vm1, %v27_v6, %v28_v11  ;;  %v34_v15 = vmul.f32 0.0001, %v33_v12  ;;  %v39_v16 = vstv %s80_s20  ;;  %v45_v17 = vstv %s81_s21 }
  0x15   :  { %v31_v18 = vsel %vm25_vm0, %v30_v7, %v29_v14  ;;  %v40_v19 = vmul.f32 %v39_v16, %v38_v8  ;;  %v51_v21 = vstv %s82_s22  ;;  %v46_v23 = vmul.f32 %v45_v17, %v44_v13  ;;  %p110_p6 = por %p109_p5, %p108_p4 }
  0x16   :  { %v35_v22 = vadd.f32 %v34_v15, %v31_v18  ;;  %v52_v25 = vmul.f32 %v51_v21, %v50_v20 }
  0x17   :  { %p111_p7 = pnand %p110_p6, %p104_p3 }
  0x18   :  { %v41_v24 = vadd.f32 %v40_v19, %v35_v22 }
  0x1a   :  { %v47_v26 = vadd.f32 %v46_v23, %v41_v24 }
  0x1c   :  { %v53_v27 = vadd.f32 %v52_v25, %v47_v26 }
  0x1e   :  { %v83_v28 = vmul.f32 -1.442695, %v53_v27 }
  0x20   :  { %89 = vpow2.f32 %v83_v28 }
  0x2a   :  { %v90_v29 = vpop.eup %89 }
  0x2b   :  { %v57_v30 = vadd.f32 1.0, %v90_v29 }
  0x2d   :  { %91 = vrcp.f32 %v57_v30 }
  0x37   :  { %v92_v31 = vpop.eup %91 }
  0x38   :  { %61 = vst.msk [vmem:[#allocation5] sm:$0x1] %vm60_vm2, %v92_v31 }
  0x39   :  { %114 = shalt.err (!%p111_p7)
}
  0x3a   :  { %s115_s28 = scalar_lea.hbm %s173_s1, 16 }
  0x3b   :  { %p116_p8 = scmp.ne.s32.totalorder %s173_s1, %s115_s28  ;;  %p119_p9 = scmp.lt.u32.totalorder %s115_s28, %s173_s1 }
  0x3d   :  { %p121_p10 = pnand %p119_p9, %p116_p8 }
  0x3f   :  { %124 = shalt.err (!%p121_p10)
}
  0x40   :  { %71 = dma.vmem_to_hbm [thread:$0]  %s69_s23, 16, %s173_s1, [#allocation3]  }
  0x41   :  { %127 = dma.done.wait [#allocation3], 16  }
  0x42   :  { %128 = vsyncadd [#allocation3], 4294967280 }
  0x43   :  { %75 = vsyncpa [#allocation3], 1 }
  0x44   :  { %76 = vsyncpa [#allocation4], 1 }

</bundles_post_ra>
